<compile_context>
chip_gen: v6e
topology: v6e:2x2x1
jax: 0.10.0
libtpu: 0.0.40
codegen_flags: <defaults>
</compile_context>

<pallas_src>
import jax
import jax.numpy as jnp
from jax import lax
from jax.experimental import pallas as pl
from jax.experimental.pallas import tpu as pltpu

# ---- hyperparameters --------------------------------------------------------
B = 2              # batch
T = 8              # sequence length
C = 32             # n_embeddings
HIDDEN = 4 * C     # 128  (exactly one vreg lane-width)
DROPOUT = 0.0      # identity at inference


# ---- fused feed-forward kernel ----------------------------------------------
def ff_kernel(x_ref, w1_ref, b1_ref, w2_ref, b2_ref, o_ref):
    # x_ref : (B*T, C)      = (16, 32)   bf16
    # w1_ref: (C, HIDDEN)   = (32, 128)  bf16  (torch W1.T, lane-dense)
    # b1_ref: (1, HIDDEN)   = (1, 128)   f32
    # w2_ref: (C, HIDDEN)   = (32, 128)  bf16  (torch-native layout, lane-dense)
    # b2_ref: (1, C)        = (1, 32)    f32
    # o_ref : (B*T, C)      = (16, 32)   f32
    x = x_ref[...]

    # Linear(C, 4C) + ReLU — bf16 MXU matmul with f32 accumulation, VPU max.
    h = jnp.dot(x, w1_ref[...], preferred_element_type=jnp.float32) + b1_ref[...]
    h = jnp.maximum(h, 0.0)

    # Linear(4C, C): contract h(M,H) with w2(C,H) over H — MXU handles the
    # transposed contraction natively, w2 stays lane-dense.
    y = lax.dot_general(
        h.astype(jnp.bfloat16), w2_ref[...],
        dimension_numbers=(((1,), (1,)), ((), ())),
        preferred_element_type=jnp.float32,
    ) + b2_ref[...]

    # Dropout(p=0.0) == identity (eval mode).
    o_ref[...] = y


def feed_forward(x, kparams, *, training=False):
    """x: (B, T, C) f32 -> (B, T, C) f32. Single fused Pallas kernel, no grid."""
    if training and DROPOUT > 0.0:
        raise NotImplementedError(
            "training-mode dropout (p>0) not implemented in the Pallas kernel")
    b, t, c = x.shape
    m = b * t
    x2d = x.reshape(m, c).astype(jnp.bfloat16)

    vmem_spec = pl.BlockSpec(memory_space=pltpu.MemorySpace.VMEM)
    y2d = pl.pallas_call(
        ff_kernel,
        out_shape=jax.ShapeDtypeStruct((m, c), jnp.float32),
        in_specs=[vmem_spec] * 5,
        out_specs=vmem_spec,
    )(x2d, kparams["w1_t"], kparams["b1"], kparams["w2"], kparams["b2"])
    return y2d.reshape(b, t, c)


# ---- parameters: torch-native init + one-time kernel-layout prep -------------
def init_torch_params(key):
    """Matches torch nn.Linear default init and (fan_out, fan_in) layout."""
    k1, k2, k3, k4 = jax.random.split(key, 4)

    def lin(kw, kb, fan_in, fan_out):
        bound = 1.0 / jnp.sqrt(fan_in)
        w = jax.random.uniform(kw, (fan_out, fan_in), jnp.float32, -bound, bound)
        b = jax.random.uniform(kb, (fan_out,), jnp.float32, -bound, bound)
        return w, b

    w1, b1 = lin(k1, k2, C, HIDDEN)     # (128, 32), (128,)
    w2, b2 = lin(k3, k4, HIDDEN, C)     # (32, 128), (32,)
    return {"w1": w1, "b1": b1, "w2": w2, "b2": b2}


def prepare_params(tp):
    """One-time layout/dtype prep (outside the per-call hot path)."""
    return {
        "w1_t": tp["w1"].T.astype(jnp.bfloat16),               # (C, HIDDEN) lane-dense
        "b1":   tp["b1"].reshape(1, HIDDEN).astype(jnp.float32),
        "w2":   tp["w2"].astype(jnp.bfloat16),                  # (C, HIDDEN) lane-dense (torch-native)
        "b2":   tp["b2"].reshape(1, C).astype(jnp.float32),
    }


# ---- references --------------------------------------------------------------
def reference_f32(x, tp):
    """Exact torch semantics in f32 (validates layout handling)."""
    h = jnp.maximum(x @ tp["w1"].T + tp["b1"], 0.0)
    return h @ tp["w2"].T + tp["b2"]


def reference_bf16(x, tp):
    """Mirrors the kernel's bf16 operands / f32 accumulation (tight check)."""
    xb = x.astype(jnp.bfloat16)
    w1b = tp["w1"].T.astype(jnp.bfloat16)
    w2b = tp["w2"].astype(jnp.bfloat16)
    h = jnp.dot(xb, w1b, preferred_element_type=jnp.float32) + tp["b1"]
    h = jnp.maximum(h, 0.0)
    y = lax.dot_general(h.astype(jnp.bfloat16), w2b,
                        dimension_numbers=(((2,), (1,)), ((), ())),
                        preferred_element_type=jnp.float32) + tp["b2"]
    return y


if __name__ == "__main__":
    key = jax.random.PRNGKey(0)
    kx, kp = jax.random.split(key)
    x = jax.random.normal(kx, (B, T, C), jnp.float32)

    tparams = init_torch_params(kp)
    kparams = prepare_params(tparams)

    out = jax.block_until_ready(feed_forward(x, kparams))
    assert out.shape == (B, T, C)

    # Tight check: identical bf16 operands / contraction, f32 accumulation.
    ref_b = reference_bf16(x, tparams)
    err_b = jnp.max(jnp.abs(out - ref_b))
    assert jnp.allclose(out, ref_b, atol=1e-3, rtol=1e-3), f"bf16-ref max err {err_b}"

    # Loose check: validates torch nn.Linear (fan_out, fan_in) semantics in f32;
    # difference is bf16 cast noise only.
    ref_f = reference_f32(x, tparams)
    err_f = jnp.max(jnp.abs(out - ref_f))
    assert err_f < 5e-2, f"f32 torch-ref max err {err_f}"

    print("KERNEL_OK")
</pallas_src>

<mosaic_0001>
module attributes {stable_mosaic.version = 11 : i64} {
  func.func @ff_kernel(%arg0: memref<16x32xbf16, #tpu.memory_space<vmem>>, %arg1: memref<32x128xbf16, #tpu.memory_space<vmem>>, %arg2: memref<1x128xf32, #tpu.memory_space<vmem>>, %arg3: memref<32x128xbf16, #tpu.memory_space<vmem>>, %arg4: memref<1x32xf32, #tpu.memory_space<vmem>>, %arg5: memref<16x32xf32, #tpu.memory_space<vmem>>) attributes {dimension_semantics = [], scalar_prefetch = 0 : i64, scratch_operands = 0 : i64, tpu.core_type = #tpu.core_type<tc>} {
    %c0 = arith.constant 0 : index
    %c0_0 = arith.constant 0 : index
    %0 = vector.load %arg0[%c0, %c0_0] : memref<16x32xbf16, #tpu.memory_space<vmem>>, vector<16x32xbf16>
    %c0_1 = arith.constant 0 : index
    %c0_2 = arith.constant 0 : index
    %1 = vector.load %arg1[%c0_1, %c0_2] : memref<32x128xbf16, #tpu.memory_space<vmem>>, vector<32x128xbf16>
    %cst = arith.constant dense<0.000000e+00> : vector<16x128xf32>
    %2 = tpu.matmul %0, %1, %cst {dimension_numbers = #tpu.dot_dimension_numbers<[1], [0], [0], [1], [0, 0, 1, 1], [], []>} : vector<16x32xbf16>, vector<32x128xbf16>, vector<16x128xf32> -> vector<16x128xf32>
    %c0_3 = arith.constant 0 : index
    %c0_4 = arith.constant 0 : index
    %3 = vector.load %arg2[%c0_3, %c0_4] : memref<1x128xf32, #tpu.memory_space<vmem>>, vector<1x128xf32>
    %4 = vector.broadcast %3 : vector<1x128xf32> to vector<16x128xf32>
    %5 = arith.addf %2, %4 : vector<16x128xf32>
    %cst_5 = arith.constant 0.000000e+00 : f32
    %6 = vector.broadcast %cst_5 : f32 to vector<16x128xf32>
    %7 = arith.maximumf %5, %6 : vector<16x128xf32>
    %8 = arith.truncf %7 : vector<16x128xf32> to vector<16x128xbf16>
    %c0_6 = arith.constant 0 : index
    %c0_7 = arith.constant 0 : index
    %9 = vector.load %arg3[%c0_6, %c0_7] : memref<32x128xbf16, #tpu.memory_space<vmem>>, vector<32x128xbf16>
    %cst_8 = arith.constant dense<0.000000e+00> : vector<16x32xf32>
    %10 = tpu.matmul %8, %9, %cst_8 {dimension_numbers = #tpu.dot_dimension_numbers<[1], [1], [0], [0], [0, 0, 1, 0], [], []>} : vector<16x128xbf16>, vector<32x128xbf16>, vector<16x32xf32> -> vector<16x32xf32>
    %c0_9 = arith.constant 0 : index
    %c0_10 = arith.constant 0 : index
    %11 = vector.load %arg4[%c0_9, %c0_10] : memref<1x32xf32, #tpu.memory_space<vmem>>, vector<1x32xf32>
    %12 = vector.broadcast %11 : vector<1x32xf32> to vector<16x32xf32>
    %13 = arith.addf %10, %12 : vector<16x32xf32>
    %c0_11 = arith.constant 0 : index
    %c0_12 = arith.constant 0 : index
    %14 = vector.load %arg5[%c0_11, %c0_12] : memref<16x32xf32, #tpu.memory_space<vmem>>, vector<16x32xf32>
    tpu.vector_store %arg5[%c0_11, %c0_12], %13 {strides = array<i32>} : memref<16x32xf32, #tpu.memory_space<vmem>>, vector<16x32xf32>,
    return
  }
}

</mosaic_0001>

<bundles_post_ra>
// kernel: tpu_custom_call.1
= control target key start
LH: loop header
LB: loop body
LE: loop exit
PB: predicated region body
PF: predicated region fallthrough
CT: control target
= control target key end

     0   :  { %10 = vsyncpa [#allocation3], 0  ;;  %s417_s0 = inlined_call_operand.hbm [shape: bf16[16,32], index: 0, kind: input, shape index: {}]   ;;  %s418_s1 = inlined_call_operand.hbm [shape: bf16[32,128], index: 1, kind: input, shape index: {}]   ;;  %s419_s2 = inlined_call_operand.vmem [shape: f32[1,128], index: 2, kind: input, shape index: {}]   ;;  %s420_s3 = inlined_call_operand.hbm [shape: bf16[32,128], index: 3, kind: input, shape index: {}]   ;;  %s421_s4 = inlined_call_operand.vmem [shape: f32[1,32], index: 4, kind: input, shape index: {}]   ;;  %s422_s5 = inlined_call_operand.hbm [shape: f32[16,32], index: 5, kind: output, shape index: {}]  }
   0x1   :  { %11 = vsyncpa [#allocation6], 0 }
   0x2   :  { %12 = vsyncpa [#allocation4], 0  ;;  %s356_s18 = smov [#allocation5]   ;;  %s357_s20 = smov [#allocation2]  }
   0x3   :  { %s30_s19 = sshll.u32 %s356_s18, 4  ;;  %s18_s21 = sshll.u32 %s357_s20, 4  ;;  %s31_s19 = int_to_ptr.vmem [resolvable:$true] %s30_s19  ;;  %s19_s21 = int_to_ptr.vmem [resolvable:$true] %s18_s21 }
   0x4   :  { %s278_s22 = scalar_lea.vmem %s31_s19, 256  ;;  %p283_p1 = scmp.lt.s32.totalorder %s31_s19, %s31_s19 }
   0x5   :  { %p279_p0 = scmp.ne.s32.totalorder %s31_s19, %s278_s22  ;;  %p284_p2 = scmp.lt.s32.totalorder %s278_s22, %s278_s22 }
   0x7   :  { %p285_p3 = por %p284_p2, %p283_p1 }
   0x9   :  { %p286_p4 = pnand %p285_p3, %p279_p0 }
   0xb   :  { %289 = shalt.err (!%p286_p4)
}
   0xc   :  { %s358_s23 = smov 64   ;;  %s359_s24 = smov 4  }
   0xd   :  { %36 = dma.hbm_to_vmem [thread:$0]  %s418_s1, 256, %s31_s19, [#allocation6], %s358_s23, %s358_s23, %s359_s24  }
   0xe   :  { %s298_s27 = scalar_lea.vmem %s19_s21, 128  ;;  %p303_p6 = scmp.lt.s32.totalorder %s19_s21, %s19_s21 }
   0xf   :  { %p299_p5 = scmp.ne.s32.totalorder %s19_s21, %s298_s27  ;;  %p304_p7 = scmp.lt.s32.totalorder %s298_s27, %s298_s27 }
  0x11   :  { %p305_p8 = por %p304_p7, %p303_p6 }
  0x13   :  { %p306_p9 = pnand %p305_p8, %p299_p5 }
  0x15   :  { %309 = shalt.err (!%p306_p9)
}
  0x16   :  { %24 = dma.hbm_to_vmem [thread:$0]  %s417_s0, 128, %s19_s21, [#allocation3], %s358_s23, %s358_s23, %s359_s24  }
  0x17   :  { %s360_s30 = smov [#allocation7]  }
  0x18   :  { %s44_s6 = sshll.u32 %s360_s30, 4  ;;  %s45_s6 = int_to_ptr.vmem [resolvable:$true] %s44_s6 }
  0x19   :  { %s318_s7 = scalar_lea.vmem %s45_s6, 256  ;;  %p323_p11 = scmp.lt.s32.totalorder %s45_s6, %s45_s6 }
  0x1a   :  { %p319_p10 = scmp.ne.s32.totalorder %s45_s6, %s318_s7  ;;  %p324_p12 = scmp.lt.s32.totalorder %s318_s7, %s318_s7 }
  0x1c   :  { %p325_p13 = por %p324_p12, %p323_p11 }
  0x1e   :  { %p326_p0 = pnand %p325_p13, %p319_p10 }
  0x20   :  { %329 = shalt.err (!%p326_p0)
}
  0x21   :  { %50 = dma.hbm_to_vmem [thread:$0]  %s420_s3, 256, %s45_s6, [#allocation6], %s358_s23, %s358_s23, %s359_s24  }
  0x22   :  { %350 = dma.done.wait [#allocation3], 128  }
  0x23   :  { %351 = vsyncadd [#allocation3], 4294967168 }
  0x24   :  { %352 = dma.done.wait [#allocation6], 512  }
  0x25   :  { %353 = vsyncadd [#allocation6], 4294966784  ;;  %v361_v0 = vmov 0.0   ;;  %vm362_vm0 = vmmov 0   ;;  %v265_v1 = vld [vmem:[#allocation5 + $0x8] sm:$0xff]   ;;  %v266_v2 = vld [vmem:[#allocation5] sm:$0xff]  }
  0x26   :  { %239 = vmatprep.subr.bf16.mxu0 %v361_v0  ;;  %243 = vmatprep.mubr.msk.bf16.mxu0 %vm362_vm0, %v361_v0  ;;  %v268_v3 = vld [vmem:[#allocation7 + $0x8] sm:$0xff]   ;;  %vm93_vm1 = vcmask 261120   ;;  %v269_v5 = vld [vmem:[#allocation7] sm:$0xff]   ;;  %s363_s11 = smov [#allocation8]  }
  0x27   :  { %247 = vmatprep.subr.bf16.mxu1 %v361_v0  ;;  %251 = vmatprep.mubr.msk.bf16.mxu1 %vm362_vm0, %v361_v0  ;;  %v267_v4 = vld [vmem:[#allocation2] sm:$0xff]   ;;  %s212_s12 = sshll.u32 %s363_s11, 4  ;;  %s213_s12 = int_to_ptr.vmem [resolvable:$true] %s212_s12 }
  0x28   :  { %240 = vmatpush3.bf16.msra.mxu0 %v265_v1  ;;  %248 = vmatpush3.bf16.xpose.msra.mxu1 %v268_v3  ;;  %v225_v6 = vld [vmem:[%s419_s2] ss:$0 sm:$0xff]  ;;  %s330_s2 = scalar_lea.vmem %s213_s12, 256  ;;  %p335_p2 = scmp.lt.s32.totalorder %s213_s12, %s213_s12 }
  0x29   :  { %241 = vmatprep.subr.bf16.mxu0 %v361_v0  ;;  %249 = vmatprep.subr.bf16.mxu1 %v361_v0  ;;  %v230_v16 = vld [vmem:[%s421_s4] ss:$0 sm:$0xff]  ;;  %p331_p1 = scmp.ne.s32.totalorder %s213_s12, %s330_s2  ;;  %p336_p3 = scmp.lt.s32.totalorder %s330_s2, %s330_s2 }
  0x2b   :  { %p337_p4 = por %p336_p3, %p335_p2 }
  0x2c   :  { %242 = vmatpush3.bf16.msra.mxu0 %v266_v2 }
  0x2d   :  { %p338_p5 = pnand %p337_p4, %p331_p1 }
  0x2f   :  { %244 = vmatmul.mubr.msk.bf16.vlgmr.msra.gmra.mxu0 %vm93_vm1, %v267_v4 }
  0x30   :  { %250 = vmatpush3.bf16.xpose.msra.mxu1 %v269_v5 }
  0xef   :  { %v131_v7 = vpop.f32.mrf.mxu0 }
  0xf0   :  { %v132_v9 = vadd.f32 %v225_v6, %v131_v7 }
  0xf1   :  { %v245_v8 = vpop.f32.mrf.mxu0 }
  0xf2   :  { %v138_v13 = vmax.f32 %v132_v9, 0.0 }
  0xf3   :  { %v134_v10 = vpop.f32.mrf.mxu0 }
  0xf4   :  { %v135_v11 = vadd.f32 %v225_v6, %v134_v10 }
  0xf5   :  { %v246_v12 = vpop.f32.mrf.mxu0 }
  0xf6   :  { %v139_v14 = vmax.f32 %v135_v11, 0.0 }
  0xf8   :  { %v140_v15 = vpack.c.bf16 %v139_v14, %v138_v13 }
  0xfa   :  { %252 = vmatmul.mubr.bf16.vlgmr.msra.gmra.mxu1 %v140_v15 }
 0x1ba   :  { %v198_v17 = vpop.f32.mrf.mxu1 }
 0x1bb   :  { %v199_v18 = vadd.f32 %v230_v16, %v198_v17 }
 0x1bc   :  { %v253_v19 = vpop.f32.mrf.mxu1 }
 0x1bd   :  { %205 = vst.msk [vmem:[#allocation8] sm:$0xff] %vm93_vm1, %v199_v18 }
 0x1be   :  { %v201_v20 = vpop.f32.mrf.mxu1 }
 0x1bf   :  { %v202_v21 = vadd.f32 %v230_v16, %v201_v20 }
 0x1c0   :  { %v254_v22 = vpop.f32.mrf.mxu1 }
 0x1c1   :  { %206 = vst.msk [vmem:[#allocation8 + $0x8] sm:$0xff] %vm93_vm1, %v202_v21 }
 0x1c2   :  { %341 = shalt.err (!%p338_p5)
}
 0x1c3   :  { %s364_s4 = smov 128   ;;  %s365_s13 = smov 8  }
 0x1c4   :  { %218 = dma.vmem_to_hbm [thread:$0]  %s213_s12, 256, %s422_s5, [#allocation4], %s364_s4, %s364_s4, %s365_s13  }
 0x1c5   :  { %354 = dma.done.wait [#allocation4], 256  }
 0x1c6   :  { %355 = vsyncadd [#allocation4], 4294967040 }
 0x1c7   :  { %222 = vsyncpa [#allocation3], 1 }
 0x1c8   :  { %223 = vsyncpa [#allocation6], 1 }
 0x1c9   :  { %224 = vsyncpa [#allocation4], 1 }

</bundles_post_ra>
